<compile_context>
chip_gen: v5e
topology: v5e:2x2
jax: 0.10.0
libtpu: 0.0.40
codegen_flags: <defaults>
</compile_context>

<pallas_src>
import functools

import jax
import jax.numpy as jnp
from jax.experimental import pallas as pl
from jax.experimental.pallas import tpu as pltpu

BN_EPS = 1e-5


def _stats_fold_kernel(x_ref, w_ref, gb_ref, params_ref, sum_sc, gram_sc,
                       *, inv_count):
    # x_ref:      (C, TL)   f32  one (batch-n, L-tile) slab of the NCL input
    # w_ref:      (O, C)    f32  Conv1d weight with the k=1 axis squeezed
    # gb_ref:     (O, 2)    f32  packed [bn_gamma, bn_beta]
    # params_ref: (O, C+1)  f32  out: packed [W_folded | b_folded]
    # sum_sc:     (C, 1)    f32  running sum_x over (N, L)
    # gram_sc:    (C, C)    f32  running sum_l x x^T over (N, L)
    n = pl.program_id(0)
    lt = pl.program_id(1)
    is_first = jnp.logical_and(n == 0, lt == 0)
    is_last = jnp.logical_and(n == pl.num_programs(0) - 1,
                              lt == pl.num_programs(1) - 1)

    @pl.when(is_first)
    def _():
        sum_sc[...] = jnp.zeros_like(sum_sc)
        gram_sc[...] = jnp.zeros_like(gram_sc)

    x = x_ref[...]                                              # (C, TL)
    sum_sc[...] += jnp.sum(x, axis=1, keepdims=True)
    gram_sc[...] += jnp.einsum("cl,dl->cd", x, x,
                               preferred_element_type=jnp.float32)

    @pl.when(is_last)
    def _():
        c = x_ref.shape[0]
        w = w_ref[...]                                          # (O, C)
        gb = gb_ref[...]                                        # (O, 2)
        gamma = gb[:, 0:1]
        beta = gb[:, 1:2]

        mean_x = sum_sc[...] * inv_count                        # (C, 1)
        ex2 = gram_sc[...] * inv_count                          # E[x x^T] (C,C)
        mean_y0 = jnp.dot(w, mean_x, preferred_element_type=jnp.float32)
        wg = jnp.dot(w, ex2, preferred_element_type=jnp.float32)
        var_y = jnp.sum(wg * w, axis=1, keepdims=True) - mean_y0 * mean_y0
        var_y = jnp.maximum(var_y, 0.0)                         # guard rounding
        scale = gamma * jax.lax.rsqrt(var_y + BN_EPS)           # (O, 1)

        params_ref[:, :c] = scale * w                           # W'
        params_ref[:, c:] = beta - scale * mean_y0              # b' (conv bias
        #                                                         cancels exactly)


def _apply_kernel(x_ref, params_ref, o_ref):
    # x_ref:      (C, TL)   f32
    # params_ref: (O, C+1)  f32  packed [W' | b']
    # o_ref:      (O, TL)   f32
    c = x_ref.shape[0]
    p = params_ref[...]
    w = p[:, :c]                                                # (O, C)
    b = p[:, c:]                                                # (O, 1)
    y = jnp.dot(w, x_ref[...], preferred_element_type=jnp.float32) + b
    o_ref[...] = jnp.maximum(y, 0.0)


def _pick_lane_tile(L):
    # Largest lane-dense tile (multiple of 128) that divides L, else full L.
    for cand in (2048, 1024, 512, 256, 128):
        if L % cand == 0:
            return cand
    return L


def conv_pass_3(x, conv_w, conv_b, bn_gamma, bn_beta):
    """x: (N, C, L) float32.  Returns (N, O, L) float32."""
    del conv_b  # pre-BN bias cancels exactly under training-mode BatchNorm
    N, C, L = x.shape
    O = conv_w.shape[0]
    w2d = conv_w.reshape(O, C)                    # (O, C, 1) -> (O, C)
    gb = jnp.stack([bn_gamma, bn_beta], axis=1)   # (O, 2) packed small params

    tl = _pick_lane_tile(L)
    n_lt = L // tl
    inv_count = 1.0 / float(N * L)

    x_spec = pl.BlockSpec((pl.Squeezed(), C, tl), lambda n, l: (n, 0, l))

    # ---- Pass 1: batch stats of x + fold BN into (W', b') ------------------
    params = pl.pallas_call(
        functools.partial(_stats_fold_kernel, inv_count=inv_count),
        out_shape=jax.ShapeDtypeStruct((O, C + 1), jnp.float32),
        grid_spec=pltpu.PrefetchScalarGridSpec(
            num_scalar_prefetch=0,
            grid=(N, n_lt),
            in_specs=[
                x_spec,
                pl.BlockSpec((O, C), lambda n, l: (0, 0)),
                pl.BlockSpec((O, 2), lambda n, l: (0, 0)),
            ],
            out_specs=pl.BlockSpec((O, C + 1), lambda n, l: (0, 0)),
            scratch_shapes=[
                pltpu.VMEM((C, 1), jnp.float32),
                pltpu.VMEM((C, C), jnp.float32),
            ],
        ),
        compiler_params=pltpu.CompilerParams(
            dimension_semantics=("arbitrary", "arbitrary"),
            vmem_limit_bytes=32 * 1024 * 1024),
    )(x, w2d, gb)

    # ---- Pass 2: o = relu(W' @ x + b'), NCL in -> NOL out ------------------
    out = pl.pallas_call(
        _apply_kernel,
        out_shape=jax.ShapeDtypeStruct((N, O, L), jnp.float32),
        grid_spec=pltpu.PrefetchScalarGridSpec(
            num_scalar_prefetch=0,
            grid=(N, n_lt),
            in_specs=[
                x_spec,
                pl.BlockSpec((O, C + 1), lambda n, l: (0, 0)),
            ],
            out_specs=pl.BlockSpec((pl.Squeezed(), O, tl),
                                   lambda n, l: (n, 0, l)),
        ),
        compiler_params=pltpu.CompilerParams(
            dimension_semantics=("parallel", "parallel"),
            vmem_limit_bytes=32 * 1024 * 1024),
    )(x, params)
    return out


def _reference(x, conv_w, conv_b, bn_gamma, bn_beta):
    # Pure-JAX reference mirroring PyTorch forward (training-mode BN).
    N, C, L = x.shape
    O = conv_w.shape[0]
    y = jnp.einsum("ncl,oc->nol", x, conv_w.reshape(O, C)) + conv_b[None, :, None]
    mean = y.mean(axis=(0, 2), keepdims=True)
    var = ((y - mean) ** 2).mean(axis=(0, 2), keepdims=True)
    y = (y - mean) / jnp.sqrt(var + BN_EPS)
    y = bn_gamma[None, :, None] * y + bn_beta[None, :, None]
    return jnp.maximum(y, 0.0)


if __name__ == "__main__":
    # Small shapes consistent with the module: Conv1d over (N, C_in, L).
    N, C_IN, L = 2, 4, 16
    N_FEATURE_MAPS = 20

    key = jax.random.PRNGKey(0)
    kx, kw, kb, kg, kbe = jax.random.split(key, 5)

    x = jax.random.normal(kx, (N, C_IN, L), dtype=jnp.float32)
    # Conv1d(in=C_IN, out=20, k=1): weight (20, C_IN, 1), bias (20,)
    conv_w = 0.3 * jax.random.normal(kw, (N_FEATURE_MAPS, C_IN, 1), dtype=jnp.float32)
    conv_b = 0.1 * jax.random.normal(kb, (N_FEATURE_MAPS,), dtype=jnp.float32)
    # BatchNorm1d(20): weight (gamma), bias (beta)
    bn_gamma = 1.0 + 0.05 * jax.random.normal(kg, (N_FEATURE_MAPS,), dtype=jnp.float32)
    bn_beta = 0.05 * jax.random.normal(kbe, (N_FEATURE_MAPS,), dtype=jnp.float32)

    out = conv_pass_3(x, conv_w, conv_b, bn_gamma, bn_beta)
    out = jax.block_until_ready(out)

    ref = _reference(x, conv_w, conv_b, bn_gamma, bn_beta)
    assert out.shape == (N, N_FEATURE_MAPS, L)
    assert jnp.max(jnp.abs(out - ref)) < 1e-4

    print("KERNEL_OK")
</pallas_src>

<mosaic_0001>
module attributes {stable_mosaic.version = 11 : i64} {
  func.func @_stats_fold_kernel(%arg0: i32, %arg1: i32, %arg2: memref<1x4x16xf32, #tpu.memory_space<vmem>>, %arg3: memref<20x4xf32, #tpu.memory_space<vmem>>, %arg4: memref<20x2xf32, #tpu.memory_space<vmem>>, %arg5: memref<20x5xf32, #tpu.memory_space<vmem>>, %arg6: memref<4x1xf32, #tpu.memory_space<vmem>>, %arg7: memref<4x4xf32, #tpu.memory_space<vmem>>) attributes {dimension_semantics = [#tpu.dimension_semantics<arbitrary>, #tpu.dimension_semantics<arbitrary>], iteration_bounds = array<i64: 2, 1>, scalar_prefetch = 0 : i64, scratch_operands = 2 : i64, tpu.core_type = #tpu.core_type<tc>, window_params = [{transform_indices = @transform_0, window_bounds = array<i64: 1, 4, 16>}, {pipeline_mode = #tpu.pipeline_mode<synchronous>, transform_indices = @transform_1, window_bounds = array<i64: 20, 4>}, {pipeline_mode = #tpu.pipeline_mode<synchronous>, transform_indices = @transform_2, window_bounds = array<i64: 20, 2>}, {pipeline_mode = #tpu.pipeline_mode<synchronous>, transform_indices = @transform_3, window_bounds = array<i64: 20, 5>}]} {
    %c0_i32 = arith.constant 0 : i32
    %0 = arith.cmpi eq, %arg0, %c0_i32 : i32
    %c0_i32_0 = arith.constant 0 : i32
    %1 = arith.cmpi eq, %arg1, %c0_i32_0 : i32
    %2 = arith.andi %0, %1 : i1
    %c1_i32 = arith.constant 1 : i32
    %3 = arith.cmpi eq, %arg0, %c1_i32 : i32
    %c0_i32_1 = arith.constant 0 : i32
    %4 = arith.cmpi eq, %arg1, %c0_i32_1 : i32
    %5 = arith.andi %3, %4 : i1
    %6 = arith.extui %2 : i1 to i32
    %c0_i32_2 = arith.constant 0 : i32
    %7 = arith.cmpi ne, %6, %c0_i32_2 : i32
    scf.if %7 {
      %cst_15 = arith.constant 0.000000e+00 : f32
      %21 = vector.broadcast %cst_15 : f32 to vector<4x1xf32>
      %c0_16 = arith.constant 0 : index
      %c0_17 = arith.constant 0 : index
      %22 = vector.load %arg6[%c0_16, %c0_17] : memref<4x1xf32, #tpu.memory_space<vmem>>, vector<4x1xf32>
      tpu.vector_store %arg6[%c0_16, %c0_17], %21 {strides = array<i32>} : memref<4x1xf32, #tpu.memory_space<vmem>>, vector<4x1xf32>,
      %cst_18 = arith.constant 0.000000e+00 : f32
      %23 = vector.broadcast %cst_18 : f32 to vector<4x4xf32>
      %c0_19 = arith.constant 0 : index
      %c0_20 = arith.constant 0 : index
      %24 = vector.load %arg7[%c0_19, %c0_20] : memref<4x4xf32, #tpu.memory_space<vmem>>, vector<4x4xf32>
      tpu.vector_store %arg7[%c0_19, %c0_20], %23 {strides = array<i32>} : memref<4x4xf32, #tpu.memory_space<vmem>>, vector<4x4xf32>,
    } else {
    }
    %c0 = arith.constant 0 : index
    %c0_3 = arith.constant 0 : index
    %c0_4 = arith.constant 0 : index
    %8 = vector.load %arg2[%c0, %c0_3, %c0_4] : memref<1x4x16xf32, #tpu.memory_space<vmem>>, vector<1x4x16xf32>
    %9 = vector.shape_cast %8 : vector<1x4x16xf32> to vector<4x16xf32>
    %c0_5 = arith.constant 0 : index
    %c0_6 = arith.constant 0 : index
    %10 = vector.load %arg6[%c0_5, %c0_6] : memref<4x1xf32, #tpu.memory_space<vmem>>, vector<4x1xf32>
    %cst = arith.constant dense<0.000000e+00> : vector<4xf32>
    %11 = vector.multi_reduction <add>, %9, %cst [1] : vector<4x16xf32> to vector<4xf32>
    %12 = vector.shape_cast %11 : vector<4xf32> to vector<4x1xf32>
    %13 = arith.addf %10, %12 : vector<4x1xf32>
    %c0_7 = arith.constant 0 : index
    %c0_8 = arith.constant 0 : index
    %14 = vector.load %arg6[%c0_7, %c0_8] : memref<4x1xf32, #tpu.memory_space<vmem>>, vector<4x1xf32>
    tpu.vector_store %arg6[%c0_7, %c0_8], %13 {strides = array<i32>} : memref<4x1xf32, #tpu.memory_space<vmem>>, vector<4x1xf32>,
    %c0_9 = arith.constant 0 : index
    %c0_10 = arith.constant 0 : index
    %15 = vector.load %arg7[%c0_9, %c0_10] : memref<4x4xf32, #tpu.memory_space<vmem>>, vector<4x4xf32>
    "tpu.trace_start"() <{level = 10 : i32, message = "cl,dl->cd"}> : () -> ()
    %cst_11 = arith.constant dense<0.000000e+00> : vector<4x4xf32>
    %16 = tpu.matmul %9, %9, %cst_11 {dimension_numbers = #tpu.dot_dimension_numbers<[1], [1], [0], [0], [0, 0, 1, 0], [], []>} : vector<4x16xf32>, vector<4x16xf32>, vector<4x4xf32> -> vector<4x4xf32>
    "tpu.trace_stop"() : () -> ()
    %17 = arith.addf %15, %16 : vector<4x4xf32>
    %c0_12 = arith.constant 0 : index
    %c0_13 = arith.constant 0 : index
    %18 = vector.load %arg7[%c0_12, %c0_13] : memref<4x4xf32, #tpu.memory_space<vmem>>, vector<4x4xf32>
    tpu.vector_store %arg7[%c0_12, %c0_13], %17 {strides = array<i32>} : memref<4x4xf32, #tpu.memory_space<vmem>>, vector<4x4xf32>,
    %19 = arith.extui %5 : i1 to i32
    %c0_i32_14 = arith.constant 0 : i32
    %20 = arith.cmpi ne, %19, %c0_i32_14 : i32
    scf.if %20 {
      %c0_15 = arith.constant 0 : index
      %c0_16 = arith.constant 0 : index
      %21 = vector.load %arg3[%c0_15, %c0_16] : memref<20x4xf32, #tpu.memory_space<vmem>>, vector<20x4xf32>
      %c0_17 = arith.constant 0 : index
      %c0_18 = arith.constant 0 : index
      %22 = vector.load %arg4[%c0_17, %c0_18] : memref<20x2xf32, #tpu.memory_space<vmem>>, vector<20x2xf32>
      %23 = vector.extract_strided_slice %22 {offsets = [0, 0], sizes = [20, 1], strides = [1, 1]} : vector<20x2xf32> to vector<20x1xf32>
      %24 = vector.extract_strided_slice %22 {offsets = [0, 1], sizes = [20, 1], strides = [1, 1]} : vector<20x2xf32> to vector<20x1xf32>
      %c0_19 = arith.constant 0 : index
      %c0_20 = arith.constant 0 : index
      %25 = vector.load %arg6[%c0_19, %c0_20] : memref<4x1xf32, #tpu.memory_space<vmem>>, vector<4x1xf32>
      %cst_21 = arith.constant 3.125000e-02 : f32
      %26 = vector.broadcast %cst_21 : f32 to vector<4x1xf32>
      %27 = arith.mulf %25, %26 : vector<4x1xf32>
      %c0_22 = arith.constant 0 : index
      %c0_23 = arith.constant 0 : index
      %28 = vector.load %arg7[%c0_22, %c0_23] : memref<4x4xf32, #tpu.memory_space<vmem>>, vector<4x4xf32>
      %cst_24 = arith.constant 3.125000e-02 : f32
      %29 = vector.broadcast %cst_24 : f32 to vector<4x4xf32>
      %30 = arith.mulf %28, %29 : vector<4x4xf32>
      %cst_25 = arith.constant dense<0.000000e+00> : vector<20x1xf32>
      %31 = tpu.matmul %21, %27, %cst_25 {dimension_numbers = #tpu.dot_dimension_numbers<[1], [0], [0], [1], [0, 0, 1, 1], [], []>} : vector<20x4xf32>, vector<4x1xf32>, vector<20x1xf32> -> vector<20x1xf32>
      %cst_26 = arith.constant dense<0.000000e+00> : vector<20x4xf32>
      %32 = tpu.matmul %21, %30, %cst_26 {dimension_numbers = #tpu.dot_dimension_numbers<[1], [0], [0], [1], [0, 0, 1, 1], [], []>} : vector<20x4xf32>, vector<4x4xf32>, vector<20x4xf32> -> vector<20x4xf32>
      %33 = arith.mulf %32, %21 : vector<20x4xf32>
      %cst_27 = arith.constant dense<0.000000e+00> : vector<20xf32>
      %34 = vector.multi_reduction <add>, %33, %cst_27 [1] : vector<20x4xf32> to vector<20xf32>
      %35 = vector.shape_cast %34 : vector<20xf32> to vector<20x1xf32>
      %36 = arith.mulf %31, %31 : vector<20x1xf32>
      %37 = arith.subf %35, %36 : vector<20x1xf32>
      %cst_28 = arith.constant 0.000000e+00 : f32
      %38 = vector.broadcast %cst_28 : f32 to vector<20x1xf32>
      %39 = arith.maximumf %37, %38 : vector<20x1xf32>
      %cst_29 = arith.constant 9.99999974E-6 : f32
      %40 = vector.broadcast %cst_29 : f32 to vector<20x1xf32>
      %41 = arith.addf %39, %40 : vector<20x1xf32>
      %42 = math.rsqrt %41 : vector<20x1xf32>
      %43 = arith.mulf %23, %42 : vector<20x1xf32>
      %44 = vector.broadcast %43 : vector<20x1xf32> to vector<20x4xf32>
      %45 = arith.mulf %44, %21 : vector<20x4xf32>
      %c0_30 = arith.constant 0 : index
      %c0_31 = arith.constant 0 : index
      %46 = vector.load %arg5[%c0_30, %c0_31] : memref<20x5xf32, #tpu.memory_space<vmem>>, vector<20x4xf32>
      tpu.vector_store %arg5[%c0_30, %c0_31], %45 {strides = array<i32>} : memref<20x5xf32, #tpu.memory_space<vmem>>, vector<20x4xf32>,
      %47 = arith.mulf %43, %31 : vector<20x1xf32>
      %48 = arith.subf %24, %47 : vector<20x1xf32>
      %c0_32 = arith.constant 0 : index
      %c4 = arith.constant 4 : index
      %49 = vector.load %arg5[%c0_32, %c4] : memref<20x5xf32, #tpu.memory_space<vmem>>, vector<20x1xf32>
      tpu.vector_store %arg5[%c0_32, %c4], %48 {strides = array<i32>} : memref<20x5xf32, #tpu.memory_space<vmem>>, vector<20x1xf32>,
    } else {
    }
    return
  }
  func.func @transform_0(%arg0: i32, %arg1: i32) -> (i32, i32, i32) {
    %c0_i32 = arith.constant 0 : i32
    %c0_i32_0 = arith.constant 0 : i32
    return %arg0, %c0_i32, %arg1 : i32, i32, i32
  }
  func.func @transform_1(%arg0: i32, %arg1: i32) -> (i32, i32) {
    %c0_i32 = arith.constant 0 : i32
    %c0_i32_0 = arith.constant 0 : i32
    %c0_i32_1 = arith.constant 0 : i32
    return %c0_i32, %c0_i32_0 : i32, i32
  }
  func.func @transform_2(%arg0: i32, %arg1: i32) -> (i32, i32) {
    %c0_i32 = arith.constant 0 : i32
    %c0_i32_0 = arith.constant 0 : i32
    %c0_i32_1 = arith.constant 0 : i32
    return %c0_i32, %c0_i32_0 : i32, i32
  }
  func.func @transform_3(%arg0: i32, %arg1: i32) -> (i32, i32) {
    %c0_i32 = arith.constant 0 : i32
    %c0_i32_0 = arith.constant 0 : i32
    %c0_i32_1 = arith.constant 0 : i32
    return %c0_i32, %c0_i32_0 : i32, i32
  }
}

</mosaic_0001>

<bundles_post_ra>
// kernel: tpu_custom_call.1
= control target key start
LH: loop header
LB: loop body
LE: loop exit
PB: predicated region body
PF: predicated region fallthrough
CT: control target
= control target key end

     0   :  { %s566_s12 = smov 0   ;;  %s568_s13 = smov 0   ;;  %s671_s0 = inlined_call_operand.vmem [shape: f32[2,4,16], index: 0, kind: input, shape index: {}]   ;;  %s672_s1 = inlined_call_operand.vmem [shape: f32[20,4], index: 1, kind: input, shape index: {}]   ;;  %s673_s2 = inlined_call_operand.vmem [shape: f32[20,2], index: 2, kind: input, shape index: {}]   ;;  %s674_s3 = inlined_call_operand.vmem [shape: f32[20,5], index: 3, kind: output, shape index: {}]  }
   0x1   :  { %s570_s14 = smov 0  }
   0x2 LB: > { %s25_s15 = sadd.s32 1, %s536_s13  ;;  %p462_p0 = scmp.ge.s32.totalorder %s540_s14, 1  ;;  %s540_s14 = sphi %s570_s14, %s13_s14   ;;  %s536_s13 = sphi %s568_s13, %s676_s13   ;;  %s532_s12 = sphi %s566_s12, %s675_s12  }
   0x3   : > { %p27_p1 = scmp.ge.s32.totalorder %s25_s15, 2  ;;  %p148_p2 = scmp.lt.s32.totalorder %s540_s14, 3 }
   0x5   : > { %s678_s15 = smov (%p27_p1, %s25_s15), 0  ;;  %p149_p3 = pnand %p462_p0, %p148_p2 }
   0x6   : > { %p169_p4 = scmp.lt.s32.totalorder (!%p149_p3), %s532_s12, 1  ;;  %p176_p5 = scmp.eq.s32.totalorder (!%p149_p3), %s532_s12, 0 }
   0x7   : > { %152 = sbr.rel (%p149_p3) target bundleno = 652 (0x28c), region = 32  ;;  %p180_p6 = scmp.eq.s32.totalorder (!%p149_p3), %s532_s12, 1 }
   0xc   : > { %s170_s16 = scalar_select %p169_p4, %s532_s12, 1  ;;  %vm185_vm0 = vcmask (%p176_p5), 3072   ;;  %vm187_vm1 = vcmask (%p176_p5), 27648   ;;  %v542_v0 = vmov (%p176_p5), 0.0  }
   0xd   : > { %184 = sbr.rel (!%p176_p5) target bundleno = 18 (0x12), region = 36  ;;  %186 = vst.msk [vmem:[#allocation2] sm:$0xf] (%p176_p5), %vm185_vm0, %v542_v0 }
   0xe   : > { %s463_s17 = sshll.u32 %s170_s16, 2  ;;  %188 = vst.msk [vmem:[#allocation3] sm:$0xf] (%p176_p5), %vm187_vm1, %v542_v0 }
   0xf   : > { %s175_s20 = scalar_lea.vmem %s671_s0, %s463_s17 }
  0x12 PF: > { %v189_v1 = vld [vmem:[%s175_s20] sm:$0xf]  ;;  %vm199_vm2 = vcmask 130048   ;;  %vm191_vm3 = vcmask 125952   ;;  %vm196_vm4 = vcmask 3072   ;;  %vm224_vm5 = vcmask 27648  }
  0x13   : > { %466 = vmatpush.xpose.msk.msra.mxu0 %vm199_vm2, %v189_v1  ;;  %v192_v2 = vsel %vm191_vm3, %v189_v1, 0.0  ;;  %vm248_vm6 = vcmask (%p180_p6), 1043456   ;;  %v599_v11 = vld [vmem:[%s672_s1] sm:$0xff] (%p180_p6)  ;;  %vm238_vm7 = vcmask (%p180_p6), 31744   ;;  %v604_v12 = vld [vmem:[%s672_s1 + $0x8] sm:$0xff] (%p180_p6)  ;;  %v543_v26 = vmov (%p180_p6), 0  }
  0x14   : > { %193 = vadd.xlane.f32.xlu0 %v192_v2  ;;  %v190_v3 = vld [vmem:[#allocation2] sm:$0xf]  ;;  %v617_v15 = vld [vmem:[%s672_s1 + $0x10] sm:$0xf] (%p180_p6)  ;;  %511 = vset.pattern.permute.xlu2 (%p180_p6), %v543_v26  ;;  %s544_s29 = smov (%p180_p6), 1   ;;  %v232_v62 = vld [vmem:[%s673_s2 + $0x8] sm:$0xff] (%p180_p6) }
  0x15   : > { %v198_v6 = vld [vmem:[#allocation3] sm:$0xf]  ;;  %510 = vset.pattern.permute.xlu0 (%p180_p6), %v543_v26  ;;  %s545_s7 = smov (%p180_p6), 3   ;;  %vm415_vm1 = vcmask (%p180_p6), 39968  }
  0x16   : > { %467 = vmatmul.msk.f32.vlgmr.msra.gmra.mxu0 %vm199_vm2, %v189_v1  ;;  %v231_v51 = vld [vmem:[%s673_s2] sm:$0xff] (%p180_p6)  ;;  %vm418_vm2 = vcmask (%p180_p6), 35872  }
  0x87   : > { %v194_v4 = vpop.xlane.xlu0 %193 }
  0x88   : > { %v195_v5 = vadd.f32 %v194_v4, %v190_v3 }
  0x8a   : > { %197 = vst.msk [vmem:[#allocation2] sm:$0xf] %vm196_vm4, %v195_v5 }
  0x91   : > { %v234_v13 = vld [vmem:[#allocation2] sm:$0xf] (%p180_p6) }
  0x92   : > { %227 = sbr.rel (!%p180_p6) target bundleno = 652 (0x28c), region = 40  ;;  %v235_v14 = vmul.f32 (%p180_p6), 0.03125, %v234_v13 }
  0x93   : > { %v220_v7 = vpop.f32.mrf.mxu0 }
  0x94   : > { %v223_v8 = vadd.f32 %v220_v7, %v198_v6  ;;  %468 = vmatpush.msk.msra.mxu0 (%p180_p6), %vm248_vm6, %v235_v14  ;;  %480 = vmatpush.msk.msra.mxu2 (%p180_p6), %vm248_vm6, %v235_v14  ;;  %v233_v6 = vld [vmem:[%s673_s2 + $0x10] sm:$0xf] (%p180_p6) }
  0x95   : > { %469 = vmatmul.msk.f32.vlgmr.msra.gmra.mxu0 (%p180_p6), %vm238_vm7, %v599_v11  ;;  %470 = vmatmul.msk.f32.vlgmr.msra.gmra.mxu2 (%p180_p6), %vm238_vm7, %v604_v12 }
  0x96   : > { %225 = vst.msk [vmem:[#allocation3] sm:$0xf] %vm224_vm5, %v223_v8 }
  0x9d   : > { %v236_v9 = vld [vmem:[#allocation3] sm:$0xf]  ;;  %471 = vmatmul.msk.f32.gmra.mxu2 %vm238_vm7, %v617_v15 }
  0x9e   : > { %v237_v10 = vmul.f32 0.03125, %v236_v9 }
  0xa0   : > { %472 = vmatpush.msk.msra.mxu1 %vm248_vm6, %v237_v10  ;;  %481 = vmatpush.msk.msra.mxu3 %vm248_vm6, %v237_v10 }
  0xa1   : > { %473 = vmatmul.msk.f32.vlgmr.msra.gmra.mxu1 %vm238_vm7, %v599_v11  ;;  %474 = vmatmul.msk.f32.vlgmr.msra.gmra.mxu3 %vm238_vm7, %v604_v12 }
  0xa9   : > { %475 = vmatmul.msk.f32.gmra.mxu3 %vm238_vm7, %v617_v15 }
 0x112   : > { %v269_v25 = vpop.f32.mrf.mxu0 }
 0x113   : > { %v319_v27 = vmul.f32 %v269_v25, %v269_v25 }
 0x118   : > { %v272_v28 = vpop.f32.mrf.mxu2 }
 0x119   : > { %v320_v33 = vmul.f32 %v272_v28, %v272_v28 }
 0x11e   : > { %v298_v16 = vpop.f32.mrf.mxu1 }
 0x11f   : > { %v307_v17 = vmul.f32 %v298_v16, %v599_v11 }
 0x120   : > { %v275_v35 = vpop.f32.mrf.mxu2 }
 0x121   : > { %v310_v18 = vsel %vm238_vm7, %v307_v17, 0.0  ;;  %v321_v38 = vmul.f32 %v275_v35, %v275_v35 }
 0x122   : > { %311 = vadd.xlane.f32.xlu0 %v310_v18 }
 0x124   : > { %v301_v19 = vpop.f32.mrf.mxu3 }
 0x125   : > { %v308_v20 = vmul.f32 %v301_v19, %v604_v12 }
 0x127   : > { %v313_v21 = vsel %vm238_vm7, %v308_v20, 0.0 }
 0x12a   : > { %314 = vadd.xlane.f32.xlu0 %v313_v21 }
 0x12c   : > { %v304_v22 = vpop.f32.mrf.mxu3 }
 0x12d   : > { %v309_v23 = vmul.f32 %v304_v22, %v617_v15 }
 0x12f   : > { %v316_v24 = vsel %vm224_vm5, %v309_v23, 0.0 }
 0x130   : > { %317 = vadd.xlane.f32.xlu1 %v316_v24 }
 0x195   : > { %v312_v29 = vpop.xlane.xlu0 %311 }
 0x196   : > { %v322_v30 = vsub.f32 %v312_v29, %v319_v27 }
 0x198   : > { %v325_v31 = vmax.f32 %v322_v30, 0.0 }
 0x19a   : > { %v328_v32 = vadd.f32 1e-05, %v325_v31 }
 0x19c   : > { %512 = vrsqrt.f32 %v328_v32  ;;  %vm337_vm9 = vweird.f32 %v328_v32 }
 0x19d   : > { %v315_v34 = vpop.xlane.xlu0 %314 }
 0x19e   : > { %v323_v36 = vsub.f32 %v315_v34, %v320_v33 }
 0x1a0   : > { %v326_v37 = vmax.f32 %v323_v36, 0.0 }
 0x1a2   : > { %v513_v39 = vpop.eup %512  ;;  %v329_v40 = vadd.f32 1e-05, %v326_v37 }
 0x1a3   : > { %v332_v41 = vmul.f32 %v513_v39, %v328_v32  ;;  %v318_v42 = vpop.xlane.xlu1 %317  ;;  %vm338_vm8 = vweird.f32 %v513_v39 }
 0x1a4   : > { %514 = vrsqrt.f32 %v329_v40  ;;  %v324_v43 = vsub.f32 %v318_v42, %v321_v38  ;;  %vm339_vm10 = vmor %vm337_vm9, %vm338_vm8  ;;  %vm347_vm12 = vweird.f32 %v329_v40 }
 0x1a5   : > { %v333_v44 = vmul.f32 %v513_v39, %v332_v41 }
 0x1a6   : > { %v327_v45 = vmax.f32 %v324_v43, 0.0 }
 0x1a7   : > { %v334_v46 = vmul.f32 0.5, %v333_v44 }
 0x1a8   : > { %v330_v47 = vadd.f32 1e-05, %v327_v45 }
 0x1a9   : > { %v335_v48 = vsub.f32 1.5, %v334_v46 }
 0x1aa   : > { %v515_v49 = vpop.eup %514  ;;  %516 = vrsqrt.f32 %v330_v47  ;;  %vm357_vm14 = vweird.f32 %v330_v47 }
 0x1ab   : > { %v342_v50 = vmul.f32 %v515_v49, %v329_v40  ;;  %v336_v52 = vmul.f32 %v513_v39, %v335_v48  ;;  %vm348_vm11 = vweird.f32 %v515_v49 }
 0x1ac   : > { %vm349_vm13 = vmor %vm347_vm12, %vm348_vm11 }
 0x1ad   : > { %v343_v53 = vmul.f32 %v515_v49, %v342_v50  ;;  %v340_v54 = vsel %vm339_vm10, %v513_v39, %v336_v52 }
 0x1ae   : > { %v361_v55 = vmul.f32 %v340_v54, %v231_v51 }
 0x1af   : > { %v344_v56 = vmul.f32 0.5, %v343_v53 }
 0x1b0   : > { %v517_v57 = vpop.eup %516  ;;  %366 = vperm.xlu0 %510, %v361_v55   ;;  %v385_v58 = vmul.f32 %v361_v55, %v269_v25 }
 0x1b1   : > { %v345_v59 = vsub.f32 1.5, %v344_v56  ;;  %v352_v60 = vmul.f32 %v517_v57, %v330_v47  ;;  %vm358_vm15 = vweird.f32 %v517_v57 }
 0x1b2   : > { %391 = vrot.lane.b32.xlu1 %v385_v58, %s544_s29  ;;  %vm359_vm0 = vmor %vm357_vm14, %vm358_vm15 }
 0x1b3   : > { %v353_v61 = vmul.f32 %v517_v57, %v352_v60  ;;  %v346_v63 = vmul.f32 %v515_v49, %v345_v59 }
 0x1b5   : > { %v354_v0 = vmul.f32 0.5, %v353_v61  ;;  %v350_v1 = vsel %vm349_vm13, %v515_v49, %v346_v63 }
 0x1b6   : > { %v362_v2 = vmul.f32 %v350_v1, %v232_v62 }
 0x1b7   : > { %v355_v3 = vsub.f32 1.5, %v354_v0 }
 0x1b8   : > { %v386_v4 = vmul.f32 %v362_v2, %v272_v28 }
 0x1b9   : > { %v356_v5 = vmul.f32 %v517_v57, %v355_v3 }
 0x1ba   : > { %393 = vrot.lane.b32.xlu2 %v386_v4, %s544_s29 }
 0x1bb   : > { %v360_v7 = vsel %vm359_vm0, %v517_v57, %v356_v5 }
 0x1bc   : > { %v363_v8 = vmul.f32 %v360_v7, %v233_v6 }
 0x1be   : > { %v387_v9 = vmul.f32 %v363_v8, %v275_v35 }
 0x1c2   : > { %395 = vrot.lane.b32.xlu2 %v387_v9, %s544_s29 }
 0x1ca   : > { %371 = vperm.xlu2 %511, %v362_v2  }
 0x1d2   : > { %376 = vperm.xlu2 %511, %v363_v8  }
 0x214   : > { %v394_v10 = vpop.permute.xlu2 %393 }
 0x215   : > { %v401_v13 = vsub.f32 %v232_v62, %v394_v10 }
 0x217   : > { %408 = vrot.lane.b32.xlu1 %v401_v13, %s545_s7 }
 0x21c   : > { %v396_v14 = vpop.permute.xlu2 %395 }
 0x21d   : > { %v402_v23 = vsub.f32 %v233_v6, %v396_v14 }
 0x222   : > { %v367_v16 = vpop.permute.xlu0 %366 }
 0x223   : > { %v379_v17 = vmul.f32 %v367_v16, %v599_v11 }
 0x224   : > { %v372_v18 = vpop.permute.xlu2 %371  ;;  %v392_v19 = vpop.permute.xlu1 %391 }
 0x225   : > { %382 = vst.msk [vmem:[%s674_s3] sm:$0xff] %vm238_vm7, %v379_v17  ;;  %v380_v20 = vmul.f32 %v372_v18, %v604_v12  ;;  %v400_v21 = vsub.f32 %v231_v51, %v392_v19 }
 0x227   : > { %383 = vst.msk [vmem:[%s674_s3 + $0x8] sm:$0xff] %vm238_vm7, %v380_v20  ;;  %406 = vrot.lane.b32.xlu2 %v400_v21, %s545_s7 }
 0x22c   : > { %v377_v22 = vpop.permute.xlu2 %376 }
 0x22d   : > { %v381_v11 = vmul.f32 %v377_v22, %v617_v15 }
 0x22f   : > { %384 = vst.msk [vmem:[%s674_s3 + $0x10] sm:$0xf] %vm224_vm5, %v381_v11  ;;  %410 = vrot.lane.b32.xlu2 %v402_v23, %s545_s7 }
 0x281   : > { %v407_v24 = vpop.permute.xlu2 %406 }
 0x282   : > { %416 = vst.msk [vmem:[%s674_s3] sm:$0xff] %vm415_vm1, %v407_v24 }
 0x289   : > { %v411_v12 = vpop.permute.xlu2 %410  ;;  %v409_v25 = vpop.permute.xlu1 %408 }
 0x28a   : > { %419 = vst.msk [vmem:[%s674_s3 + $0x10] sm:$0xf] %vm418_vm2, %v411_v12 }
 0x28b   : > { %417 = vst.msk [vmem:[%s674_s3 + $0x8] sm:$0xff] %vm415_vm1, %v409_v25 }
 0x28c PF: > { %s13_s14 = sadd.s32 1, %s540_s14   ;;  %s675_s12 = smov %s536_s13 }
 0x28d   : > { %p10_p7 = scmp.ge.s32.totalorder %s13_s14, 4   ;;  %s676_s13 = smov %s678_s15 }
 0x28f   :  { %12 = sbr.rel (!%p10_p7) target bundleno = 2 (0x2), region = 66 }

</bundles_post_ra>
